<compile_context>
chip_gen: v7x
topology: tpu7x:2x2x1
jax: 0.10.0
libtpu: 0.0.40
codegen_flags: <defaults>
</compile_context>

<pallas_src>
import functools

import jax
import jax.numpy as jnp
from jax.experimental import pallas as pl
from jax.experimental.pallas import tpu as pltpu


def _round_up(x, m):
    return ((x + m - 1) // m) * m


def _vmem_cap_bytes():
    """Physical per-core VMEM (128 MiB v5e/v6e, 64 MiB v7x) minus headroom."""
    cap = 128 << 20
    try:
        info = pltpu.get_tpu_info()
        cap = int(getattr(info, "vmem_capacity_bytes", cap))
    except Exception:
        pass
    return max(int(cap * 0.8), 16 << 20)


def _mlm_head_kernel(x_ref, w1_ref, b1_ref, gamma_ref, beta_ref,
                     wdec_ref, bdec_ref, out_ref, h_scratch, *, eps):
    """Grid: (row tiles [parallel], vocab tiles [arbitrary, innermost])."""
    j = pl.program_id(1)  # vocab axis -- sequential within a core

    @pl.when(j == 0)
    def _():
        # dense: (tm, H) @ (H, H); operands in w1's dtype (bf16 fast path),
        # accumulation in f32 on the MXU.
        x = x_ref[...].astype(w1_ref.dtype)
        h = jnp.dot(x, w1_ref[...], preferred_element_type=jnp.float32)
        h = h + b1_ref[...]
        # exact gelu (erf form), as in BERT's ACT2FN["gelu"]; f32 on the EUP.
        h = h * 0.5 * (1.0 + jax.lax.erf(h * jnp.float32(0.7071067811865476)))
        # LayerNorm over H, eps=1e-12, statistics in f32.
        mu = jnp.mean(h, axis=-1, keepdims=True)
        var = jnp.mean((h - mu) * (h - mu), axis=-1, keepdims=True)
        h = (h - mu) * jax.lax.rsqrt(var + eps)
        h = h * gamma_ref[...] + beta_ref[...]
        h_scratch[...] = h.astype(h_scratch.dtype)

    # decoder: (tm, H) @ (H, vt) + (1, vt), f32 accumulation.
    logits = jnp.dot(h_scratch[...], wdec_ref[...],
                     preferred_element_type=jnp.float32)
    out_ref[...] = (logits + bdec_ref[...]).astype(out_ref.dtype)


def prepare_mlm_head_params(params, *, vocab_tile=2048,
                            dense_dtype=jnp.bfloat16,
                            decoder_dtype=jnp.bfloat16):
    """One-time weight preparation. Call OUTSIDE the per-step hot path.

    params: dict with
        w1    : (H, H)   dense weight, already transposed to (in, out)
        b1    : (H,)     dense bias
        gamma : (H,)     LayerNorm weight
        beta  : (H,)     LayerNorm bias
        w_dec : (H, V)   decoder weight (embedding matrix transposed)
        b_dec : (V,)     decoder output bias

    Pads the vocab dim once to a multiple of the vocab tile and casts weights
    to the requested compute dtypes (bf16 by default = native MXU path on
    v5e/v6e/v7x).  The per-call wrapper never touches the big decoder matrix.
    """
    H = params["w1"].shape[0]
    V = params["w_dec"].shape[1]

    vt = min(_round_up(max(vocab_tile, 128), 128), _round_up(V, 128))
    Vp = _round_up(V, vt)

    w_dec = params["w_dec"].astype(decoder_dtype)
    b_dec = params["b_dec"].astype(jnp.float32)
    if Vp != V:
        w_dec = jnp.pad(w_dec, ((0, 0), (0, Vp - V)))
        b_dec = jnp.pad(b_dec, ((0, Vp - V),))

    return {
        "w1": params["w1"].astype(dense_dtype),
        "b1": params["b1"].reshape(1, H).astype(jnp.float32),
        "gamma": params["gamma"].reshape(1, H).astype(jnp.float32),
        "beta": params["beta"].reshape(1, H).astype(jnp.float32),
        "w_dec": w_dec,
        "b_dec": b_dec.reshape(1, Vp),
        "vocab_size": int(V),
        "vocab_tile": int(vt),
    }


def bert_only_mlm_head(sequence_output, prepared, *, row_tile=1024,
                       eps=1e-12, out_dtype=None):
    """sequence_output: (B, S, H).  `prepared` from prepare_mlm_head_params.

    Returns (B, S, V) logits.  out_dtype defaults to the decoder-weight dtype
    (bf16 fast path => bf16 logits, halving the dominant logits writeback).
    """
    B, S, H = sequence_output.shape
    w1 = prepared["w1"]
    b1 = prepared["b1"]
    gamma = prepared["gamma"]
    beta = prepared["beta"]
    w_dec = prepared["w_dec"]
    b_dec = prepared["b_dec"]
    V = prepared["vocab_size"]
    vt = prepared["vocab_tile"]
    Vp = w_dec.shape[1]
    M = B * S
    if out_dtype is None:
        out_dtype = w_dec.dtype
    h_dtype = w_dec.dtype  # decoder GEMM runs in the decoder-weight dtype

    def _isz(d):
        return jnp.dtype(d).itemsize

    # --- row (M) tiling ---------------------------------------------------
    # Cap tm so there are always >=2 row tiles (feeds both v7x TensorCores);
    # on 1-TC chips with small M this costs one extra w_dec pass -- accepted.
    tm_req = max(8, _round_up(row_tile, 8))
    tm_cap = max(8, _round_up((M + 1) // 2, 8))
    tm = min(tm_req, tm_cap)

    # --- VMEM sizing against the physical cap (64 MiB v7x / 128 MiB else) --
    cap = _vmem_cap_bytes()

    def _vmem_est(tm_, vt_):
        return (2 * tm_ * H * _isz(sequence_output.dtype)   # x tiles
                + 2 * H * H * _isz(w1.dtype)                 # w1 (resident)
                + 2 * 4 * H * 4                              # b1/gamma/beta
                + 3 * H * vt_ * _isz(w_dec.dtype)            # w_dec (<=3 bufs)
                + 2 * vt_ * 4                                # b_dec
                + 2 * tm_ * vt_ * _isz(out_dtype)            # out tiles
                + tm_ * H * _isz(h_dtype))                   # h scratch

    # Shrink vocab tile first (doesn't change w_dec re-stream count), then tm.
    while (_vmem_est(tm, vt) > cap and vt > 256
           and (vt // 2) % 128 == 0 and Vp % (vt // 2) == 0):
        vt //= 2
    while _vmem_est(tm, vt) > cap and tm > 256:
        tm = max(256, _round_up(tm // 2, 8))

    Mp = _round_up(M, tm)
    n_mtiles = Mp // tm
    n_vtiles = Vp // vt

    x2d = sequence_output.reshape(M, H)
    if Mp != M:
        x2d = jnp.pad(x2d, ((0, Mp - M), (0, 0)))   # rows only; cheap vs w_dec

    vmem_limit = int(min(max(_vmem_est(tm, vt) + (8 << 20), 32 << 20), cap))

    # w_dec gets a 3rd pipeline buffer so the heavier j==0 step (dense+LN)
    # doesn't expose the next w_dec DMA.
    wdec_spec = pl.BlockSpec((H, vt), lambda i, j: (0, j))
    if n_vtiles >= 3:
        try:
            wdec_spec = pl.BlockSpec((H, vt), lambda i, j: (0, j),
                                     pipeline_mode=pl.Buffered(3))
        except TypeError:
            pass  # older BlockSpec signature; default double-buffering

    cost = pl.CostEstimate(
        flops=2 * Mp * H * H + 2 * Mp * H * Vp,
        transcendentals=Mp * H,
        bytes_accessed=(Mp * H * _isz(x2d.dtype)
                        + H * H * _isz(w1.dtype)
                        + n_mtiles * H * Vp * _isz(w_dec.dtype)   # re-streamed
                        + Vp * _isz(b_dec.dtype)
                        + Mp * Vp * _isz(out_dtype)),
    )

    out2d = pl.pallas_call(
        functools.partial(_mlm_head_kernel, eps=eps),
        out_shape=jax.ShapeDtypeStruct((Mp, Vp), out_dtype),
        grid_spec=pltpu.PrefetchScalarGridSpec(
            num_scalar_prefetch=0,
            grid=(n_mtiles, n_vtiles),
            in_specs=[
                pl.BlockSpec((tm, H), lambda i, j: (i, 0)),   # x row tile
                pl.BlockSpec((H, H), lambda i, j: (0, 0)),    # w1 (resident)
                pl.BlockSpec((1, H), lambda i, j: (0, 0)),    # b1
                pl.BlockSpec((1, H), lambda i, j: (0, 0)),    # gamma
                pl.BlockSpec((1, H), lambda i, j: (0, 0)),    # beta
                wdec_spec,                                     # w_dec vocab tile
                pl.BlockSpec((1, vt), lambda i, j: (0, j)),   # b_dec vocab tile
            ],
            out_specs=pl.BlockSpec((tm, vt), lambda i, j: (i, j)),
            scratch_shapes=[pltpu.VMEM((tm, H), h_dtype)],
        ),
        compiler_params=pltpu.CompilerParams(
            dimension_semantics=("parallel", "arbitrary"),
            vmem_limit_bytes=vmem_limit),
        cost_estimate=cost,
    )(x2d, w1, b1, gamma, beta, w_dec, b_dec)

    return out2d[:M, :V].reshape(B, S, V)


def _reference(sequence_output, params, eps=1e-12):
    """Pure-JAX f32 reference for the same forward pass."""
    x = sequence_output.astype(jnp.float32)
    h = x @ params["w1"].astype(jnp.float32) + params["b1"].astype(jnp.float32)
    h = jax.nn.gelu(h, approximate=False)
    mu = jnp.mean(h, axis=-1, keepdims=True)
    var = jnp.mean((h - mu) ** 2, axis=-1, keepdims=True)
    h = (h - mu) * jax.lax.rsqrt(var + eps)
    h = h * params["gamma"].astype(jnp.float32) + params["beta"].astype(jnp.float32)
    return h @ params["w_dec"].astype(jnp.float32) + params["b_dec"].astype(jnp.float32)


if __name__ == "__main__":
    key = jax.random.PRNGKey(0)

    def make_params(k, H, V):
        ks = jax.random.split(k, 4)
        return {
            "w1":    jax.random.normal(ks[0], (H, H), jnp.float32) * 0.02,
            "b1":    jax.random.normal(ks[1], (H,), jnp.float32) * 0.02,
            "gamma": jnp.ones((H,), jnp.float32),
            "beta":  jnp.zeros((H,), jnp.float32),
            # decoder_model_embedding_weights is (V, H); decoder does x @ E^T,
            # so we pass its transpose (H, V).
            "w_dec": (jax.random.normal(ks[2], (V, H), jnp.float32) * 0.02).T,
            "b_dec": jnp.zeros((V,), jnp.float32),
        }

    # --- Test 1: ragged M (=14) and V (=300), pure-f32 path, tight check ----
    B, S, H, V = 2, 7, 128, 300
    k1, k2, k3, k4 = jax.random.split(key, 4)
    params1 = make_params(k1, H, V)
    x1 = jax.random.normal(k2, (B, S, H), jnp.float32)
    prep1 = prepare_mlm_head_params(params1, vocab_tile=512,
                                    dense_dtype=jnp.float32,
                                    decoder_dtype=jnp.float32)
    out1 = jax.block_until_ready(
        bert_only_mlm_head(x1, prep1, row_tile=64, out_dtype=jnp.float32))
    ref1 = _reference(x1, params1)
    assert out1.shape == (B, S, V), out1.shape
    err1 = float(jnp.max(jnp.abs(out1.astype(jnp.float32) - ref1)))
    assert err1 < 1e-4, err1

    # --- Test 2: multiple row & vocab tiles, bf16 fast path -----------------
    B, S, H, V = 2, 64, 128, 1024
    params2 = make_params(k3, H, V)
    x2 = jax.random.normal(k4, (B, S, H), jnp.float32)
    prep2 = prepare_mlm_head_params(params2, vocab_tile=256)  # bf16 defaults
    out2 = jax.block_until_ready(
        bert_only_mlm_head(x2, prep2, row_tile=32))
    ref2 = _reference(x2, params2)
    assert out2.shape == (B, S, V), out2.shape
    # bf16 operands / bf16 logits => expected mixed-precision drift vs f32 ref.
    err2 = float(jnp.max(jnp.abs(out2.astype(jnp.float32) - ref2)))
    assert err2 < 5e-2, err2

    print("KERNEL_OK")
</pallas_src>

<mosaic_0001>
module attributes {stable_mosaic.version = 11 : i64} {
  func.func @_mlm_head_kernel(%arg0: i32, %arg1: i32, %arg2: memref<8x128xf32, #tpu.memory_space<vmem>>, %arg3: memref<128x128xf32, #tpu.memory_space<vmem>>, %arg4: memref<1x128xf32, #tpu.memory_space<vmem>>, %arg5: memref<1x128xf32, #tpu.memory_space<vmem>>, %arg6: memref<1x128xf32, #tpu.memory_space<vmem>>, %arg7: memref<128x384xf32, #tpu.memory_space<vmem>>, %arg8: memref<1x384xf32, #tpu.memory_space<vmem>>, %arg9: memref<8x384xf32, #tpu.memory_space<vmem>>, %arg10: memref<8x128xf32, #tpu.memory_space<vmem>>) attributes {dimension_semantics = [#tpu.dimension_semantics<parallel>, #tpu.dimension_semantics<arbitrary>], iteration_bounds = array<i64: 2, 1>, scalar_prefetch = 0 : i64, scratch_operands = 1 : i64, tpu.core_type = #tpu.core_type<tc>, window_params = [{transform_indices = @transform_0, window_bounds = array<i64: 8, 128>}, {pipeline_mode = #tpu.pipeline_mode<synchronous>, transform_indices = @transform_1, window_bounds = array<i64: 128, 128>}, {pipeline_mode = #tpu.pipeline_mode<synchronous>, transform_indices = @transform_2, window_bounds = array<i64: 1, 128>}, {pipeline_mode = #tpu.pipeline_mode<synchronous>, transform_indices = @transform_3, window_bounds = array<i64: 1, 128>}, {pipeline_mode = #tpu.pipeline_mode<synchronous>, transform_indices = @transform_4, window_bounds = array<i64: 1, 128>}, {transform_indices = @transform_5, window_bounds = array<i64: 128, 384>}, {transform_indices = @transform_6, window_bounds = array<i64: 1, 384>}, {transform_indices = @transform_7, window_bounds = array<i64: 8, 384>}]} {
    %c0_i32 = arith.constant 0 : i32
    %0 = arith.cmpi eq, %arg1, %c0_i32 : i32
    %1 = arith.extui %0 : i1 to i32
    %c0_i32_0 = arith.constant 0 : i32
    %2 = arith.cmpi ne, %1, %c0_i32_0 : i32
    scf.if %2 {
      %c0_8 = arith.constant 0 : index
      %c0_9 = arith.constant 0 : index
      %10 = vector.load %arg2[%c0_8, %c0_9] : memref<8x128xf32, #tpu.memory_space<vmem>>, vector<8x128xf32>
      %c0_10 = arith.constant 0 : index
      %c0_11 = arith.constant 0 : index
      %11 = vector.load %arg3[%c0_10, %c0_11] : memref<128x128xf32, #tpu.memory_space<vmem>>, vector<128x128xf32>
      %cst_12 = arith.constant dense<0.000000e+00> : vector<8x128xf32>
      %12 = tpu.matmul %10, %11, %cst_12 {dimension_numbers = #tpu.dot_dimension_numbers<[1], [0], [0], [1], [0, 0, 1, 1], [], []>} : vector<8x128xf32>, vector<128x128xf32>, vector<8x128xf32> -> vector<8x128xf32>
      %c0_13 = arith.constant 0 : index
      %c0_14 = arith.constant 0 : index
      %13 = vector.load %arg4[%c0_13, %c0_14] : memref<1x128xf32, #tpu.memory_space<vmem>>, vector<1x128xf32>
      %14 = vector.broadcast %13 : vector<1x128xf32> to vector<8x128xf32>
      %15 = arith.addf %12, %14 : vector<8x128xf32>
      %cst_15 = arith.constant 5.000000e-01 : f32
      %16 = vector.broadcast %cst_15 : f32 to vector<8x128xf32>
      %17 = arith.mulf %15, %16 : vector<8x128xf32>
      %cst_16 = arith.constant 0.707106769 : f32
      %18 = vector.broadcast %cst_16 : f32 to vector<8x128xf32>
      %19 = arith.mulf %15, %18 : vector<8x128xf32>
      %20 = math.erf %19 : vector<8x128xf32>
      %cst_17 = arith.constant 1.000000e+00 : f32
      %21 = vector.broadcast %cst_17 : f32 to vector<8x128xf32>
      %22 = arith.addf %21, %20 : vector<8x128xf32>
      %23 = arith.mulf %17, %22 : vector<8x128xf32>
      %cst_18 = arith.constant dense<0.000000e+00> : vector<8xf32>
      %24 = vector.multi_reduction <add>, %23, %cst_18 [1] : vector<8x128xf32> to vector<8xf32>
      %25 = vector.shape_cast %24 : vector<8xf32> to vector<8x1xf32>
      %cst_19 = arith.constant 1.280000e+02 : f32
      %26 = vector.broadcast %cst_19 : f32 to vector<8x1xf32>
      %27 = arith.divf %25, %26 : vector<8x1xf32>
      %28 = vector.broadcast %27 : vector<8x1xf32> to vector<8x128xf32>
      %29 = arith.subf %23, %28 : vector<8x128xf32>
      %30 = vector.broadcast %27 : vector<8x1xf32> to vector<8x128xf32>
      %31 = arith.subf %23, %30 : vector<8x128xf32>
      %32 = arith.mulf %29, %31 : vector<8x128xf32>
      %cst_20 = arith.constant dense<0.000000e+00> : vector<8xf32>
      %33 = vector.multi_reduction <add>, %32, %cst_20 [1] : vector<8x128xf32> to vector<8xf32>
      %34 = vector.shape_cast %33 : vector<8xf32> to vector<8x1xf32>
      %cst_21 = arith.constant 1.280000e+02 : f32
      %35 = vector.broadcast %cst_21 : f32 to vector<8x1xf32>
      %36 = arith.divf %34, %35 : vector<8x1xf32>
      %37 = vector.broadcast %27 : vector<8x1xf32> to vector<8x128xf32>
      %38 = arith.subf %23, %37 : vector<8x128xf32>
      %cst_22 = arith.constant 9.99999996E-13 : f32
      %39 = vector.broadcast %cst_22 : f32 to vector<8x1xf32>
      %40 = arith.addf %36, %39 : vector<8x1xf32>
      %41 = math.rsqrt %40 : vector<8x1xf32>
      %42 = vector.broadcast %41 : vector<8x1xf32> to vector<8x128xf32>
      %43 = arith.mulf %38, %42 : vector<8x128xf32>
      %c0_23 = arith.constant 0 : index
      %c0_24 = arith.constant 0 : index
      %44 = vector.load %arg5[%c0_23, %c0_24] : memref<1x128xf32, #tpu.memory_space<vmem>>, vector<1x128xf32>
      %45 = vector.broadcast %44 : vector<1x128xf32> to vector<8x128xf32>
      %46 = arith.mulf %43, %45 : vector<8x128xf32>
      %c0_25 = arith.constant 0 : index
      %c0_26 = arith.constant 0 : index
      %47 = vector.load %arg6[%c0_25, %c0_26] : memref<1x128xf32, #tpu.memory_space<vmem>>, vector<1x128xf32>
      %48 = vector.broadcast %47 : vector<1x128xf32> to vector<8x128xf32>
      %49 = arith.addf %46, %48 : vector<8x128xf32>
      %c0_27 = arith.constant 0 : index
      %c0_28 = arith.constant 0 : index
      %50 = vector.load %arg10[%c0_27, %c0_28] : memref<8x128xf32, #tpu.memory_space<vmem>>, vector<8x128xf32>
      tpu.vector_store %arg10[%c0_27, %c0_28], %49 {strides = array<i32>} : memref<8x128xf32, #tpu.memory_space<vmem>>, vector<8x128xf32>,
    } else {
    }
    %c0 = arith.constant 0 : index
    %c0_1 = arith.constant 0 : index
    %3 = vector.load %arg10[%c0, %c0_1] : memref<8x128xf32, #tpu.memory_space<vmem>>, vector<8x128xf32>
    %c0_2 = arith.constant 0 : index
    %c0_3 = arith.constant 0 : index
    %4 = vector.load %arg7[%c0_2, %c0_3] : memref<128x384xf32, #tpu.memory_space<vmem>>, vector<128x384xf32>
    %cst = arith.constant dense<0.000000e+00> : vector<8x384xf32>
    %5 = tpu.matmul %3, %4, %cst {dimension_numbers = #tpu.dot_dimension_numbers<[1], [0], [0], [1], [0, 0, 1, 1], [], []>} : vector<8x128xf32>, vector<128x384xf32>, vector<8x384xf32> -> vector<8x384xf32>
    %c0_4 = arith.constant 0 : index
    %c0_5 = arith.constant 0 : index
    %6 = vector.load %arg8[%c0_4, %c0_5] : memref<1x384xf32, #tpu.memory_space<vmem>>, vector<1x384xf32>
    %7 = vector.broadcast %6 : vector<1x384xf32> to vector<8x384xf32>
    %8 = arith.addf %5, %7 : vector<8x384xf32>
    %c0_6 = arith.constant 0 : index
    %c0_7 = arith.constant 0 : index
    %9 = vector.load %arg9[%c0_6, %c0_7] : memref<8x384xf32, #tpu.memory_space<vmem>>, vector<8x384xf32>
    tpu.vector_store %arg9[%c0_6, %c0_7], %8 {strides = array<i32>} : memref<8x384xf32, #tpu.memory_space<vmem>>, vector<8x384xf32>,
    return
  }
  func.func @transform_0(%arg0: i32, %arg1: i32) -> (i32, i32) {
    %c0_i32 = arith.constant 0 : i32
    %c0_i32_0 = arith.constant 0 : i32
    return %arg0, %c0_i32 : i32, i32
  }
  func.func @transform_1(%arg0: i32, %arg1: i32) -> (i32, i32) {
    %c0_i32 = arith.constant 0 : i32
    %c0_i32_0 = arith.constant 0 : i32
    %c0_i32_1 = arith.constant 0 : i32
    return %c0_i32, %c0_i32_0 : i32, i32
  }
  func.func @transform_2(%arg0: i32, %arg1: i32) -> (i32, i32) {
    %c0_i32 = arith.constant 0 : i32
    %c0_i32_0 = arith.constant 0 : i32
    %c0_i32_1 = arith.constant 0 : i32
    return %c0_i32, %c0_i32_0 : i32, i32
  }
  func.func @transform_3(%arg0: i32, %arg1: i32) -> (i32, i32) {
    %c0_i32 = arith.constant 0 : i32
    %c0_i32_0 = arith.constant 0 : i32
    %c0_i32_1 = arith.constant 0 : i32
    return %c0_i32, %c0_i32_0 : i32, i32
  }
  func.func @transform_4(%arg0: i32, %arg1: i32) -> (i32, i32) {
    %c0_i32 = arith.constant 0 : i32
    %c0_i32_0 = arith.constant 0 : i32
    %c0_i32_1 = arith.constant 0 : i32
    return %c0_i32, %c0_i32_0 : i32, i32
  }
  func.func @transform_5(%arg0: i32, %arg1: i32) -> (i32, i32) {
    %c0_i32 = arith.constant 0 : i32
    %c0_i32_0 = arith.constant 0 : i32
    return %c0_i32, %arg1 : i32, i32
  }
  func.func @transform_6(%arg0: i32, %arg1: i32) -> (i32, i32) {
    %c0_i32 = arith.constant 0 : i32
    %c0_i32_0 = arith.constant 0 : i32
    return %c0_i32, %arg1 : i32, i32
  }
  func.func @transform_7(%arg0: i32, %arg1: i32) -> (i32, i32) {
    %c0_i32 = arith.constant 0 : i32
    return %arg0, %arg1 : i32, i32
  }
}

</mosaic_0001>

<bundles_post_ra>
// kernel: tpu_custom_call.1
= control target key start
LH: loop header
LB: loop body
LE: loop exit
PB: predicated region body
PF: predicated region fallthrough
CT: control target
= control target key end

     0   :  { %12 = vsyncpa [#allocation4], 0  ;;  %s1652_s0 = inlined_call_operand.hbm [shape: f32[16,128], index: 0, kind: input, shape index: {}]   ;;  %s1653_s1 = inlined_call_operand.hbm [shape: f32[128,128], index: 1, kind: input, shape index: {}]   ;;  %s1654_s2 = inlined_call_operand.vmem [shape: f32[1,128], index: 2, kind: input, shape index: {}]   ;;  %s1655_s3 = inlined_call_operand.vmem [shape: f32[1,128], index: 3, kind: input, shape index: {}]   ;;  %s1656_s4 = inlined_call_operand.vmem [shape: f32[1,128], index: 4, kind: input, shape index: {}]   ;;  %s1657_s5 = inlined_call_operand.hbm [shape: f32[128,384], index: 5, kind: input, shape index: {}]   ;;  %s1658_s6 = inlined_call_operand.vmem [shape: f32[1,384], index: 6, kind: input, shape index: {}]   ;;  %s1659_s7 = inlined_call_operand.hbm [shape: f32[16,384], index: 7, kind: output, shape index: {}]  }
   0x1   :  { %14 = vsyncpa [#allocation4 + $0x1], 0 }
   0x2   :  { %15 = vsyncpa [#allocation7], 0 }
   0x3   :  { %16 = vsyncpa [#allocation5], 0 }
   0x4   :  { %18 = vsyncpa [#allocation5 + $0x1], 0  ;;  %s1363_s24 = smov 0   ;;  %s1365_s25 = smov 0  }
   0x5   :  { %s1367_s26 = smov 0   ;;  %s1369_s27 = smov 0  }
   0x6   :  { %s1371_s28 = smov 0   ;;  %s1373_s29 = smov 0  }
   0x7 LB: > { %1666 = sst [smem:[#allocation13_spill]] %s1290_s24  ;;  %s839_s30 = sadd.s32 4294967295, %s1310_s29   ;;  %s1310_s29 = sphi %s1373_s29, %s24_s29   ;;  %s1306_s28 = sphi %s1371_s28, %s1687_s28   ;;  %s1302_s27 = sphi %s1369_s27, %s1686_s27   ;;  %s1298_s26 = sphi %s1367_s26, %s1685_s26   ;;  %s1294_s25 = sphi %s1365_s25, %s1684_s25   ;;  %s1290_s24 = sphi %s1363_s24, %s1683_s24  }
   0x8   : > { %s840_s8 = sadd.s32 4294967294, %s1310_s29   ;;  %p56_p0 = scmp.ne.s32.totalorder %s1294_s25, %s1290_s24 }
   0x9   : > { %p1397_p1 = scmp.eq.s32.totalorder %s839_s30, 0  ;;  %p1401_p2 = scmp.eq.s32.totalorder %s839_s30, 1 }
   0xa   : > { %p224_p3 = scmp.eq.s32.totalorder %s840_s8, 1  ;;  %p841_p5 = scmp.ge.s32.totalorder %s1310_s29, 1 }
   0xb   : > { %s1667_s9 = scalar_select %p1397_p1, 1, 0 }
   0xc   : > { %p1407_p4 = por %p1397_p1, %p56_p0  ;;  %p1412_p6 = por %p224_p3, %p56_p0 }
   0xd   : > { %p231_p7 = scmp.lt.s32.totalorder %s1310_s29, 3  ;;  %s1312_s14 = smov [#allocation6]  }
   0xe   : > { %s1669_s11 = scalar_select %p1407_p4, 1, 0 }
   0xf   : > { %s1670_s12 = scalar_select %p1412_p6, 1, 0 }
  0x10   : > { %p1417_p8 = pnand %p841_p5, %p231_p7  ;;  %s243_s15 = sshll.u32 %s1312_s14, 4  ;;  %s1421_s15 = int_to_ptr.vmem [resolvable:$true] %s243_s15 }
  0x11   : > { %1671 = sst [smem:[#allocation14_spill]] %s1670_s12  ;;  %s1313_s17 = smov [#allocation8]  }
  0x12   : > { %p1056_p9 = pneg %p1417_p8  ;;  %s268_s18 = sshll.u32 %s1313_s17, 4  ;;  %s1432_s18 = int_to_ptr.vmem [resolvable:$true] %s268_s18 }
  0x13   : > { %s1138_s21 = scalar_lea.hbm %s1653_s1, 2048 }
  0x14   : > { %p1428_p11 = pnand %p1056_p9, %p1397_p1  ;;  %p1139_p12 = scmp.ne.s32.totalorder %s1653_s1, %s1138_s21 }
  0x15   : > { %p1145_p5 = scmp.lt.u32.totalorder %s1138_s21, %s1653_s1 }
  0x16   : > { %p1140_p13 = pneg %p1428_p11 }
  0x18   : > { %p1141_p0 = pnand %p1140_p13, %p1139_p12 }
  0x1a   : > { %p1142_p3 = pneg %p1141_p0 }
  0x1c   : > { %p1147_p7 = pnand %p1145_p5, %p1142_p3 }
  0x1e   : > { %1150 = shalt.err (!%p1147_p7)
}
  0x1f   : > { %s1151_s14 = scalar_lea.vmem %s1421_s15, 2048  ;;  %p1159_p1 = scmp.lt.s32.totalorder %s1421_s15, %s1421_s15 }
  0x20   : > { %p1152_p9 = scmp.ne.s32.totalorder %s1421_s15, %s1151_s14  ;;  %p1160_p12 = scmp.lt.s32.totalorder %s1151_s14, %s1151_s14 }
  0x22   : > { %p1154_p10 = pnand %p1152_p9, %p1140_p13  ;;  %p1161_p0 = por %p1160_p12, %p1159_p1 }
  0x24   : > { %p1155_p6 = pneg %p1154_p10 }
  0x26   : > { %p1162_p4 = pnand %p1161_p0, %p1155_p6 }
  0x28   : > { %1165 = shalt.err (!%p1162_p4)
}
  0x29   : > { %s1314_s17 = smov 128   ;;  %s1315_s19 = smov 8  }
  0x2a   : > { %1059 = dma.hbm_to_vmem [thread:$0]  (!%p1428_p11), %s1653_s1, 2048, %s1421_s15, [#allocation7], %s1314_s17, %s1314_s17, %s1315_s19  }
  0x2b   : > { %s1166_s30 = scalar_lea.hbm %s1657_s5, 6144 }
  0x2c   : > { %p1167_p1 = scmp.ne.s32.totalorder %s1657_s5, %s1166_s30  ;;  %p1173_p10 = scmp.lt.u32.totalorder %s1166_s30, %s1657_s5 }
  0x2e   : > { %p1169_p4 = pnand %p1167_p1, %p1140_p13 }
  0x30   : > { %p1170_p6 = pneg %p1169_p4 }
  0x32   : > { %p1175_p3 = pnand %p1173_p10, %p1170_p6 }
  0x34   : > { %1178 = shalt.err (!%p1175_p3)
}
  0x35   : > { %s1179_s15 = scalar_lea.vmem %s1432_s18, 6144  ;;  %p1187_p12 = scmp.lt.s32.totalorder %s1432_s18, %s1432_s18 }
  0x36   : > { %p1180_p5 = scmp.ne.s32.totalorder %s1432_s18, %s1179_s15  ;;  %p1188_p0 = scmp.lt.s32.totalorder %s1179_s15, %s1179_s15 }
  0x38   : > { %p1182_p7 = pnand %p1180_p5, %p1140_p13  ;;  %p1189_p1 = por %p1188_p0, %p1187_p12 }
  0x3a   : > { %p1183_p9 = pneg %p1182_p7 }
  0x3c   : > { %p1190_p4 = pnand %p1189_p1, %p1183_p9 }
  0x3e   : > { %1193 = shalt.err (!%p1190_p4)
}
  0x3f   : > { %s1316_s24 = smov 384   ;;  %s1317_s12 = smov 24  }
  0x40   : > { %1062 = dma.hbm_to_vmem [thread:$0]  (!%p1428_p11), %s1657_s5, 6144, %s1432_s18, [#allocation7], %s1316_s24, %s1316_s24, %s1317_s12  }
  0x41   : > { %s36_s20 = sadd.s32 1, %s1306_s28  ;;  %s43_s21 = sadd.s32 1, %s1298_s26 }
  0x42   : > { %p38_p13 = scmp.ge.s32.totalorder %s36_s20, 2  ;;  %p50_p6 = scmp.ne.s32.totalorder %s1298_s26, %s1294_s25 }
  0x43   : > { %p51_p10 = scmp.eq.s32.totalorder %s1310_s29, 0  ;;  %p1073_p3 = scmp.lt.s32.totalorder %s1310_s29, 2 }
  0x44   : > { %s1689_s20 = smov (%p38_p13, %s36_s20), 0  ;;  %p1496_p7 = por %p1401_p2, %p50_p6 }
  0x45   : > { %p52_p5 = por %p51_p10, %p50_p6  ;;  %s40_s16 = ssub.s32 %s1306_s28, %s1689_s20 }
  0x46   : > { %s1674_s22 = scalar_select %p1496_p7, 1, 0 }
  0x47   : > { %s290_s23 = sand.u32 1, %s1298_s26   ;;  %p41_p9 = scmp.eq.s32.totalorder %s40_s16, 0 }
  0x48   : > { %s846_s18 = sshll.u32 %s290_s23, 3  ;;  %s847_s30 = sshll.u32 %s1306_s28, 7 }
  0x49   : > { %s1505_s8 = scalar_select %p41_p9, %s1298_s26, %s43_s21  }
  0x4a   : > { %s1510_s24 = scalar_lea.hbm %s1652_s0, %s847_s30  ;;  %s294_s10 = scalar_lea.vmem [#allocation3], %s846_s18 }
  0x4b   : > { %s301_s12 = sshll.u32 %s294_s10, 4  ;;  %p1514_p2 = pnand %p1073_p3, %p52_p5  ;;  %s1518_s12 = int_to_ptr.vmem [resolvable:$true] %s301_s12 }
  0x4c   : > { %s291_s19 = scalar_lea.sflag [#allocation4], %s290_s23  ;;  %s1194_s21 = scalar_lea.hbm %s1510_s24, 128 }
  0x4d   : > { %p1195_p11 = scmp.ne.s32.totalorder %s1510_s24, %s1194_s21  ;;  %p1196_p12 = pneg %p1514_p2 }
  0x4e   : > { %s1199_s30 = scalar_lea.hbm %s1652_s0, 256  ;;  %p1200_p4 = scmp.lt.u32.totalorder %s1510_s24, %s1652_s0 }
  0x4f   : > { %p1197_p0 = pnand %p1196_p12, %p1195_p11  ;;  %p1201_p13 = scmp.lt.u32.totalorder %s1199_s30, %s1194_s21 }
  0x50   : > { %p1203_p10 = scmp.lt.u32.totalorder %s1194_s21, %s1510_s24 }
  0x51   : > { %p1198_p1 = pneg %p1197_p0  ;;  %p1202_p6 = por %p1201_p13, %p1200_p4 }
  0x53   : > { %p1204_p3 = por %p1203_p10, %p1202_p6 }
  0x55   : > { %p1205_p5 = pnand %p1204_p3, %p1198_p1 }
  0x57   : > { %1208 = shalt.err (!%p1205_p5)
}
  0x58   : > { %s1209_s23 = scalar_lea.vmem %s1518_s12, 128  ;;  %s1318_s10 = smov [#allocation3]  }
  0x59   : > { %p1210_p9 = scmp.ne.s32.totalorder %s1518_s12, %s1209_s23  ;;  %s1214_s16 = sshll.u32 %s1318_s10, 4  ;;  %s1215_s16 = int_to_ptr.vmem [resolvable:$false] %s1214_s16 }
  0x5a   : > { %s1216_s18 = scalar_lea.vmem %s1215_s16, 256  ;;  %p1217_p7 = scmp.lt.s32.totalorder %s1518_s12, %s1215_s16 }
  0x5b   : > { %p1212_p11 = pnand %p1210_p9, %p1196_p12  ;;  %p1218_p4 = scmp.lt.s32.totalorder %s1216_s18, %s1209_s23 }
  0x5d   : > { %p1213_p0 = pneg %p1212_p11  ;;  %p1219_p13 = por %p1218_p4, %p1217_p7 }
  0x5f   : > { %p1220_p6 = pnand %p1219_p13, %p1213_p0 }
  0x61   : > { %1223 = shalt.err (!%p1220_p6)
}
  0x62   : > { %1066 = dma.hbm_to_vmem [thread:$0]  (!%p1514_p2), %s1510_s24, 128, %s1518_s12, %s291_s19  }
  0x63   : > { %310 = sbr.rel (%p1417_p8) target bundleno = 916 (0x394), region = 48  ;;  %s1548_s21 = sand.u32 (!%p1417_p8), 1, %s1294_s25  }
  0x64   : > { %s849_s30 = sshll.u32 (!%p1417_p8), %s1548_s21, 3  ;;  %s313_s14 = scalar_lea.sflag (!%p1417_p8), [#allocation4], %s1548_s21 }
  0x65   : > { %s1552_s15 = scalar_lea.vmem (!%p1417_p8), [#allocation3], %s849_s30  ;;  %p1676_p7 = scmp.ne.s32.totalorder (!%p1417_p8), %s1669_s11, 0 }
  0x6a   : > { %1277 = dma.done.wait (%p1676_p7), %s313_s14, 128  }
  0x6b   : > { %1279 = vsyncadd (%p1676_p7), %s313_s14, 4294967168  ;;  %p1677_p2 = scmp.ne.s32.totalorder %s1667_s9, 0 }
  0x6d   : > { %1281 = dma.done.wait (%p1677_p2), [#allocation7], 8192  }
  0x6e   : > { %1283 = vsyncadd (%p1677_p2), [#allocation7], 4294959104  ;;  %v1319_v0 = vmov 0.0|0.0   ;;  %vm1320_vm0 = vmmov 0   ;;  %v1321_v1 = vmov 0.0   ;;  %v371_v2 = vld [vmem:[#allocation6] sm:$0xff] }
  0x6f   : > { %962 = vmatprep.subr.bf16.mxu0 %v1319_v0  ;;  %924 = vmatprep.mubr.msk.f32.mxu0 %vm1320_vm0, %v1321_v1  ;;  %v372_v3 = vld [vmem:[#allocation6 + $0x8] sm:$0xff]  ;;  %v373_v4 = vld [vmem:[#allocation6 + $0x10] sm:$0xff]  ;;  %v374_v6 = vld [vmem:[#allocation6 + $0x18] sm:$0xff]  ;;  %s1042_s19 = smul.u32 24, %s1548_s21  ;;  %p1678_p12 = scmp.ne.s32.totalorder %s1674_s22, 0 }
  0x70   : > { %628 = vmatprep.mubr.f32.mxu1 %v1321_v1  ;;  %v963_v5 = vpack.c.bf16 %v372_v3, %v371_v2  ;;  %v966_v7 = vpack.c.bf16 %v374_v6, %v373_v4  ;;  %v375_v8 = vld [vmem:[#allocation6 + $0x20] sm:$0xff]  ;;  %v376_v9 = vld [vmem:[#allocation6 + $0x28] sm:$0xff]  ;;  %v377_v11 = vld [vmem:[#allocation6 + $0x30] sm:$0xff]  ;;  %s1043_s16 = smul.u32 384, %s1302_s27  ;;  %s709_s27 = scalar_lea.sflag [#allocation5], %s1548_s21 }
  0x71   : > { %v969_v10 = vpack.c.bf16 %v376_v9, %v375_v8  ;;  %v378_v12 = vld [vmem:[#allocation6 + $0x38] sm:$0xff]  ;;  %v379_v14 = vld [vmem:[#allocation6 + $0x40] sm:$0xff]  ;;  %v380_v15 = vld [vmem:[#allocation6 + $0x48] sm:$0xff]  ;;  %s358_s18 = scalar_lea.vmem [#allocation9], %s1042_s19  ;;  %s1322_s13 = smov [#allocation9]  }
  0x72   : > { %964 = vmatpush3.bf16.msra.mxu0 %v963_v5  ;;  %v972_v13 = vpack.c.bf16 %v378_v12, %v377_v11  ;;  %v975_v16 = vpack.c.bf16 %v380_v15, %v379_v14  ;;  %v381_v17 = vld [vmem:[#allocation6 + $0x50] sm:$0xff]  ;;  %v382_v18 = vld [vmem:[#allocation6 + $0x58] sm:$0xff]  ;;  %v383_v20 = vld [vmem:[#allocation6 + $0x60] sm:$0xff]  ;;  %s725_s30 = sshll.u32 %s358_s18, 4  ;;  %s1603_s9 = scalar_lea.hbm %s1659_s7, %s1043_s16  ;;  %s1605_s30 = int_to_ptr.vmem [resolvable:$true] %s725_s30 }
  0x73   : > { %965 = vmatprep.subr.bf16.mxu0 %v1319_v0  ;;  %v978_v19 = vpack.c.bf16 %v382_v18, %v381_v17  ;;  %v384_v21 = vld [vmem:[#allocation6 + $0x68] sm:$0xff]  ;;  %v385_v23 = vld [vmem:[#allocation6 + $0x70] sm:$0xff]  ;;  %v386_v24 = vld [vmem:[#allocation6 + $0x78] sm:$0xff]  ;;  %s1224_s11 = scalar_lea.vmem %s1605_s30, 384  ;;  %s1228_s24 = sshll.u32 %s1322_s13, 4  ;;  %s1229_s24 = int_to_ptr.vmem [resolvable:$false] %s1228_s24 }
  0x74   : > { %v981_v22 = vpack.c.bf16 %v384_v21, %v383_v20  ;;  %v984_v25 = vpack.c.bf16 %v386_v24, %v385_v23  ;;  %v370_v26 = vld [vmem:[%s1552_s15] sm:$0xff]  ;;  %v500_v36 = vld [vmem:[#allocation8 + $0x8] sm:$0xff]  ;;  %v503_v37 = vld [vmem:[#allocation8 + $0x20] sm:$0xff]  ;;  %p1225_p8 = scmp.ne.s32.totalorder %s1605_s30, %s1224_s11  ;;  %s1230_s12 = scalar_lea.vmem %s1229_s24, 768 }
  0x75   : > { %v852_v27 = vld [vmem:[%s1654_s2] ss:$0 sm:$0xff]  ;;  %v499_v38 = vld [vmem:[#allocation8] sm:$0xff]  ;;  %v986_v39 = vpack.c.bf16 %v503_v37, %v500_v36  ;;  %v502_v40 = vld [vmem:[#allocation8 + $0x18] sm:$0xff]  ;;  %p1231_p3 = scmp.lt.s32.totalorder %s1605_s30, %s1229_s24  ;;  %p1232_p5 = scmp.lt.s32.totalorder %s1230_s12, %s1224_s11 }
  0x76   : > { %967 = vmatpush3.bf16.msra.mxu0 %v966_v7  ;;  %v501_v41 = vld [vmem:[#allocation8 + $0x10] sm:$0xff]  ;;  %v504_v42 = vld [vmem:[#allocation8 + $0x28] sm:$0xff]  ;;  %v988_v43 = vpack.c.bf16 %v502_v40, %v499_v38  ;;  %v506_v45 = vld [vmem:[#allocation8 + $0x38] sm:$0xff]  ;;  %p1226_p1 = pnand %p1225_p8, %p1678_p12 }
  0x77   : > { %968 = vmatprep.subr.bf16.mxu0 %v1319_v0  ;;  %v1019_v44 = vpack.c.bf16 %v504_v42, %v501_v41  ;;  %v509_v46 = vld [vmem:[#allocation8 + $0x50] sm:$0xff]  ;;  %987 = vmatprep.subr.bf16.mxu1 %v986_v39  ;;  %v508_v49 = vld [vmem:[#allocation8 + $0x48] sm:$0xff]  ;;  %v507_v50 = vld [vmem:[#allocation8 + $0x40] sm:$0xff]  ;;  %p1233_p9 = por %p1232_p5, %p1231_p3 }
  0x78   : > { %v505_v47 = vld [vmem:[#allocation8 + $0x30] sm:$0xff]  ;;  %v990_v48 = vpack.c.bf16 %v509_v46, %v506_v45  ;;  %v510_v51 = vld [vmem:[#allocation8 + $0x58] sm:$0xff]  ;;  %989 = vmatpush1.bf16.msra.mxu1 %v988_v43  ;;  %v512_v54 = vld [vmem:[#allocation8 + $0x68] sm:$0xff]  ;;  %p1227_p10 = pneg %p1226_p1 }
  0x79   : > { %v992_v52 = vpack.c.bf16 %v508_v49, %v505_v47  ;;  %v1022_v53 = vpack.c.bf16 %v510_v51, %v507_v50  ;;  %v515_v55 = vld [vmem:[#allocation8 + $0x80] sm:$0xff]  ;;  %v514_v58 = vld [vmem:[#allocation8 + $0x78] sm:$0xff]  ;;  %v513_v59 = vld [vmem:[#allocation8 + $0x70] sm:$0xff] }
  0x7a   : > { %970 = vmatpush3.bf16.msra.mxu0 %v969_v10  ;;  %v511_v56 = vld [vmem:[#allocation8 + $0x60] sm:$0xff]  ;;  %991 = vmatprep.subr.bf16.mxu1 %v990_v48  ;;  %v994_v57 = vpack.c.bf16 %v515_v55, %v512_v54  ;;  %v516_v60 = vld [vmem:[#allocation8 + $0x88] sm:$0xff]  ;;  %v518_v4 = vld [vmem:[#allocation8 + $0x98] sm:$0xff]  ;;  %p1234_p11 = pnand %p1233_p9, %p1227_p10 }
  0x7b   : > { %971 = vmatprep.subr.bf16.mxu0 %v1319_v0  ;;  %v996_v61 = vpack.c.bf16 %v514_v58, %v511_v56  ;;  %v1025_v62 = vpack.c.bf16 %v516_v60, %v513_v59  ;;  %v521_v5 = vld [vmem:[#allocation8 + $0xb0] sm:$0xff]  ;;  %v520_v8 = vld [vmem:[#allocation8 + $0xa8] sm:$0xff]  ;;  %v519_v9 = vld [vmem:[#allocation8 + $0xa0] sm:$0xff] }
  0x7c   : > { %993 = vmatpush1.bf16.msra.mxu1 %v992_v52  ;;  %v998_v6 = vpack.c.bf16 %v521_v5, %v518_v4  ;;  %v517_v7 = vld [vmem:[#allocation8 + $0x90] sm:$0xff]  ;;  %v522_v11 = vld [vmem:[#allocation8 + $0xb8] sm:$0xff]  ;;  %v527_v14 = vld [vmem:[#allocation8 + $0xe0] sm:$0xff] }
  0x7d   : > { %995 = vmatprep.subr.bf16.mxu1 %v994_v57  ;;  %v1000_v10 = vpack.c.bf16 %v520_v8, %v517_v7  ;;  %v1028_v12 = vpack.c.bf16 %v522_v11, %v519_v9  ;;  %v526_v17 = vld [vmem:[#allocation8 + $0xd8] sm:$0xff]  ;;  %v525_v18 = vld [vmem:[#allocation8 + $0xd0] sm:$0xff]  ;;  %v528_v20 = vld [vmem:[#allocation8 + $0xe8] sm:$0xff]  ;;  %v549_v57 = vlaneseq }
  0x7e   : > { %973 = vmatpush3.bf16.msra.mxu0 %v972_v13  ;;  %v524_v13 = vld [vmem:[#allocation8 + $0xc8] sm:$0xff]  ;;  %v530_v21 = vld [vmem:[#allocation8 + $0xf8] sm:$0xff]  ;;  %v1031_v23 = vpack.c.bf16 %v528_v20, %v525_v18  ;;  %v537_v36 = vld [vmem:[#allocation8 + $0x130] sm:$0xff] }
  0x7f   : > { %974 = vmatprep.subr.bf16.mxu0 %v1319_v0  ;;  %v1002_v15 = vpack.c.bf16 %v527_v14, %v524_v13  ;;  %v540_v37 = vld [vmem:[#allocation8 + $0x148] sm:$0xff]  ;;  %v542_v38 = vld [vmem:[#allocation8 + $0x158] sm:$0xff]  ;;  %v545_v39 = vld [vmem:[#allocation8 + $0x170] sm:$0xff]  ;;  %v550_v58 = vshrl.u32 %v549_v57, 7 }
  0x80   : > { %997 = vmatpush1.bf16.msra.mxu1 %v996_v61  ;;  %v1037_v41 = vpack.c.bf16 %v540_v37, %v537_v36  ;;  %v1014_v42 = vpack.c.bf16 %v545_v39, %v542_v38  ;;  %v541_v43 = vld [vmem:[#allocation8 + $0x150] sm:$0xff]  ;;  %v543_v45 = vld [vmem:[#allocation8 + $0x160] sm:$0xff]  ;;  %v546_v46 = vld [vmem:[#allocation8 + $0x178] sm:$0xff] }
  0x81   : > { %999 = vmatprep.subr.bf16.mxu1 %v998_v6  ;;  %v1040_v48 = vpack.c.bf16 %v546_v46, %v543_v45  ;;  %v854_v55 = vld [vmem:[%s1656_s4] ss:$0 sm:$0xff]  ;;  %v551_v59 = vsub.s32 0, %v550_v58  ;;  %v559_v60 = vsub.s32 2, %v550_v58 }
  0x82   : > { %976 = vmatpush3.bf16.msra.mxu0 %v975_v16  ;;  %v523_v16 = vld [vmem:[#allocation8 + $0xc0] sm:$0xff]  ;;  %v547_v61 = vld [vmem:[%s1658_s6] sm:$0x7] }
  0x83   : > { %977 = vmatprep.subr.bf16.mxu0 %v1319_v0 }
  0x84   : > { %1001 = vmatpush1.bf16.msra.mxu1 %v1000_v10 }
  0x85   : > { %1003 = vmatprep.subr.bf16.mxu1 %v1002_v15 }
  0x86   : > { %979 = vmatpush3.bf16.msra.mxu0 %v978_v19  ;;  %v1004_v19 = vpack.c.bf16 %v526_v17, %v523_v16 }
  0x87   : > { %980 = vmatprep.subr.bf16.mxu0 %v1319_v0 }
  0x88   : > { %1005 = vmatpush1.bf16.msra.mxu1 %v1004_v19 }
  0x8a   : > { %982 = vmatpush3.bf16.msra.mxu0 %v981_v22  ;;  %v533_v22 = vld [vmem:[#allocation8 + $0x110] sm:$0xff] }
  0x8b   : > { %983 = vmatprep.subr.bf16.mxu0 %v1319_v0  ;;  %v1006_v24 = vpack.c.bf16 %v533_v22, %v530_v21 }
  0x8d   : > { %1007 = vmatprep.subr.bf16.mxu1 %v1006_v24 }
  0x8e   : > { %985 = vmatpush3.bf16.msra.mxu0 %v984_v25  ;;  %v529_v25 = vld [vmem:[#allocation8 + $0xf0] sm:$0xff] }
  0x8f   : > { %1018 = vmatprep.subr.bf16.mxu0 %v1319_v0 }
  0x91   : > { %925 = vmatmul.mubr.f32.vlgmr.msra.gmra.mrb[0].mxu0 %v370_v26  ;;  %v532_v26 = vld [vmem:[#allocation8 + $0x108] sm:$0xff] }
  0x92   : > { %959 = vmatprep.mubr.msk.f32.mxu0 %vm1320_vm0, %v1321_v1  ;;  %1020 = vmatpush3.bf16.msra.mxu0 %v1019_v44  ;;  %v544_v44 = vld [vmem:[#allocation8 + $0x168] sm:$0xff] }
  0x93   : > { %1021 = vmatprep.subr.bf16.mxu0 %v1319_v0  ;;  %v1016_v47 = vpack.c.bf16 %v544_v44, %v541_v43 }
  0x96   : > { %1023 = vmatpush3.bf16.msra.mxu0 %v1022_v53  ;;  %v853_v53 = vld [vmem:[%s1655_s3] ss:$0 sm:$0xff] }
  0x97   : > { %1024 = vmatprep.subr.bf16.mxu0 %v1319_v0 }
  0x9a   : > { %1026 = vmatpush3.bf16.msra.mxu0 %v1025_v62  ;;  %v555_v62 = vsub.s32 1, %v550_v58 }
  0x9b   : > { %1027 = vmatprep.subr.bf16.mxu0 %v1319_v0 }
  0x9e   : > { %1029 = vmatpush3.bf16.msra.mxu0 %v1028_v12 }
  0x9f   : > { %1030 = vmatprep.subr.bf16.mxu0 %v1319_v0 }
  0xa2   : > { %1032 = vmatpush3.bf16.msra.mxu0 %v1031_v23 }
  0xa3   : > { %1033 = vmatprep.subr.bf16.mxu0 %v1319_v0 }
 0x164   : > { %v460_v28 = vpop.f32.mrb[0].mxu0 }
 0x165   : > { %v461_v29 = vadd.f32 %v852_v27, %v460_v28  ;;  %v926_v30 = vpop.f32.mrb[1].mxu0  ;;  %v531_v27 = vld [vmem:[#allocation8 + $0x100] sm:$0xff]  ;;  %v1008_v28 = vpack.c.bf16 %v532_v26, %v529_v25 }
 0x166   : > { %v536_v30 = vld [vmem:[#allocation8 + $0x128] sm:$0xff] }
 0x167   : > { %v465_v31 = vmul.f32 0.70710677, %v461_v29  ;;  %v464_v33 = vmul.f32 0.5, %v461_v29  ;;  %v534_v29 = vld [vmem:[#allocation8 + $0x118] sm:$0xff]  ;;  %1009 = vmatpush1.bf16.msra.mxu1 %v1008_v28 }
 0x169   : > { %1134 = verf.f32 %v465_v31  ;;  %v539_v31 = vld [vmem:[#allocation8 + $0x140] sm:$0xff] }
 0x173   : > { %v1135_v32 = vpop.eup %1134 }
 0x174   : > { %v467_v34 = vadd.f32 1.0, %v1135_v32  ;;  %v1034_v32 = vpack.c.bf16 %v534_v29, %v531_v27 }
 0x176   : > { %v468_v35 = vmul.f32 %v467_v34, %v464_v33  ;;  %v1010_v33 = vpack.c.bf16 %v539_v31, %v536_v30  ;;  %v535_v34 = vld [vmem:[#allocation8 + $0x120] sm:$0xff]  ;;  %1035 = vmatpush3.bf16.msra.mxu0 %v1034_v32 }
 0x177   : > { %1036 = vmatprep.subr.bf16.mxu0 %v1319_v0 }
 0x178   : > { %469 = vadd.xlane.f32.xlu0 %v468_v35  ;;  %1011 = vmatprep.subr.bf16.mxu1 %v1010_v33 }
 0x17a   : > { %1038 = vmatpush3.bf16.msra.mxu0 %v1037_v41 }
 0x17b   : > { %1039 = vmatprep.subr.bf16.mxu0 %v1319_v0 }
 0x17e   : > { %1041 = vmatpush3.bf16.msra.mxu0 %v1040_v48 }
 0x205   : > { %v470_v63 = vpop.xlane.xlu0 %469 }
 0x206   : > { %v472_v1 = vmul.f32 0.0078125, %v470_v63  ;;  %v552_v63 = vrot.slane %v547_v61, %v551_v59 }
 0x208   : > { %v1580_v2 = vsub.f32 %v468_v35, %v472_v1  ;;  %v538_v35 = vld [vmem:[#allocation8 + $0x138] sm:$0xff]  ;;  %v560_v1 = vrot.slane %v547_v61, %v559_v60 }
 0x209   : > { %v1012_v40 = vpack.c.bf16 %v538_v35, %v535_v34 }
 0x20a   : > { %v474_v3 = vmul.f32 %v1580_v2, %v1580_v2 }
 0x20b   : > { %1013 = vmatpush1.bf16.msra.mxu1 %v1012_v40 }
 0x20c   : > { %475 = vadd.xlane.f32.xlu0 %v474_v3  ;;  %1015 = vmatprep.subr.bf16.mxu1 %v1014_v42 }
 0x20f   : > { %1017 = vmatpush1.bf16.msra.mxu1 %v1016_v47 }
 0x299   : > { %v476_v49 = vpop.xlane.xlu0 %475 }
 0x29a   : > { %v477_v50 = vmul.f32 0.0078125, %v476_v49 }
 0x29c   : > { %v478_v51 = vadd.f32 1e-12, %v477_v50 }
 0x29e   : > { %1136 = vrsqrt.f32 %v478_v51 }
 0x2a8   : > { %v1137_v52 = vpop.eup %1136 }
 0x2a9   : > { %v480_v54 = vmul.f32 %v1137_v52, %v1580_v2  ;;  %v556_v2 = vrot.slane %v547_v61, %v555_v62 }
 0x2ab   : > { %v488_v0 = vmul.f32 %v853_v53, %v480_v54 }
 0x2ad   : > { %v496_v56 = vadd.f32 %v854_v55, %v488_v0 }
 0x2af   : > { %629 = vmatmul.mubr.f32.vlgmr.msra.gmra.mrb[0].mxu1 %v496_v56  ;;  %960 = vmatmul.mubr.f32.vlgmr.msra.gmra.mrb[2].mxu0 %v496_v56 }
 0x382   : > { %v630_v3 = vpop.f32.mrb[0].mxu1  ;;  %v701_v4 = vpop.f32.mrb[2].mxu0 }
 0x383   : > { %v631_v5 = vadd.f32 %v630_v3, %v552_v63  ;;  %v702_v6 = vadd.f32 %v701_v4, %v560_v1  ;;  %v632_v7 = vpop.f32.mrb[1].mxu1  ;;  %v961_v8 = vpop.f32.mrb[3].mxu0 }
 0x384   : > { %v633_v9 = vadd.f32 %v632_v7, %v556_v2 }
 0x385   : > { %705 = vst [vmem:[%s358_s18] sm:$0xff] %v631_v5  ;;  %707 = vst [vmem:[%s358_s18 + $0x10] sm:$0xff] %v702_v6 }
 0x386   : > { %706 = vst [vmem:[%s358_s18 + $0x8] sm:$0xff] %v633_v9 }
 0x387   : > { %1237 = shalt.err (!%p1234_p11)
}
 0x388   : > { %s1238_s21 = scalar_lea.hbm %s1603_s9, 384  ;;  %s1242_s23 = scalar_lea.hbm %s1659_s7, 768 }
 0x389   : > { %p1239_p0 = scmp.ne.s32.totalorder %s1603_s9, %s1238_s21  ;;  %p1243_p6 = scmp.lt.u32.totalorder %s1603_s9, %s1659_s7 }
 0x38a   : > { %p1244_p7 = scmp.lt.u32.totalorder %s1242_s23, %s1238_s21  ;;  %p1246_p8 = scmp.lt.u32.totalorder %s1238_s21, %s1603_s9 }
 0x38b   : > { %p1240_p4 = pnand %p1239_p0, %p1678_p12 }
 0x38c   : > { %p1245_p2 = por %p1244_p7, %p1243_p6 }
 0x38d   : > { %p1241_p13 = pneg %p1240_p4 }
 0x38e   : > { %p1247_p1 = por %p1246_p8, %p1245_p2 }
 0x390   : > { %p1248_p10 = pnand %p1247_p1, %p1241_p13 }
 0x392   : > { %1251 = shalt.err (!%p1248_p10)
}
 0x393   : > { %1054 = dma.vmem_to_hbm [thread:$0]  (%p1678_p12), %s1605_s30, 384, %s1603_s9, %s709_s27  }
 0x394 PF: > { %s1679_s18 = sld [smem:[#allocation13_spill]]  ;;  %s1680_s14 = sld [smem:[#allocation14_spill]] }
 0x395   : > { %p1682_p5 = scmp.ge.s32.totalorder %s1310_s29, 2 }
 0x39a   : > { %s737_s15 = sand.u32 1, %s1679_s18   ;;  %p1681_p3 = scmp.ne.s32.totalorder %s1680_s14, 0 }
 0x39b   : > { %s738_s11 = scalar_lea.sflag [#allocation5], %s737_s15 }
 0x39c   : > { %p1068_p9 = pnand %p1682_p5, %p1681_p3 }
 0x39e   : > { %1285 = dma.done.wait (!%p1068_p9), %s738_s11, 384  }
 0x39f   : > { %1287 = vsyncadd (!%p1068_p9), %s738_s11, 4294966912  ;;  %s24_s29 = sadd.s32 1, %s1310_s29   ;;  %s1683_s24 = smov %s1294_s25 }
 0x3a0   : > { %p21_p11 = scmp.ge.s32.totalorder %s24_s29, 4   ;;  %s1684_s25 = smov %s1298_s26 }
 0x3a1   : > { %s1685_s26 = smov %s1505_s8  ;;  %s1686_s27 = smov %s1306_s28 }
 0x3a2   : > { %s1687_s28 = smov %s1689_s20  ;;  %23 = sbr.rel (!%p21_p11) target bundleno = 7 (0x7), region = 109 }
 0x3a9   :  { %743 = vsyncpa [#allocation4], 1 }
 0x3aa   :  { %745 = vsyncpa [#allocation4 + $0x1], 1 }
 0x3ab   :  { %746 = vsyncpa [#allocation7], 1 }
 0x3ac   :  { %747 = vsyncpa [#allocation5], 1 }
 0x3ad   :  { %749 = vsyncpa [#allocation5 + $0x1], 1 }

</bundles_post_ra>
